<compile_context>
chip_gen: v6e
topology: v6e:2x2x1
jax: 0.10.0
libtpu: 0.0.40
codegen_flags: <defaults>
</compile_context>

<pallas_src>
import math

import jax
import jax.numpy as jnp
from jax.experimental import pallas as pl
from jax.experimental.pallas import tpu as pltpu

LAMBDA_REG = 0.1
_LN2 = math.log(2.0)
_LANES = 128
_SUBLANES = 8


def _round_up(x, m):
    return ((x + m - 1) // m) * m


def _cdiv(a, b):
    return (a + b - 1) // b


def _kernel(x_ref, t_ref, bce_acc_ref, gram_ref):
    """Grid = (core, batch_tile).  Per step:
         bce_acc (1, 8, L) += row-folded elementwise BCE partials (pure VPU adds)
         gram    (1, L, L) += T_tile^T @ X_tile                     (MXU)
       Both outputs use a constant block index along the inner axis, so they stay
       resident in VMEM as accumulators; init happens only on the first inner step.
    """
    i = pl.program_id(1)

    @pl.when(i == 0)
    def _init():
        bce_acc_ref[...] = jnp.zeros_like(bce_acc_ref)
        gram_ref[...] = jnp.zeros_like(gram_ref)

    x_raw = x_ref[...]                      # (tile_rows, L), native dtype
    t_raw = t_ref[...]
    x = x_raw.astype(jnp.float32)
    t = t_raw.astype(jnp.float32)

    # Numerically stable BCE-with-logits per element (VPU + EUP only).
    bce = jnp.maximum(x, 0.0) - x * t + jnp.log(1.0 + jnp.exp(-jnp.abs(x)))
    # Defer the cross-lane reduction: fold the row axis into the (8, L)
    # accumulator with vreg-wise adds (no XLU, no scalar round-trip per step).
    bce_acc_ref[...] += jnp.sum(
        bce.reshape(-1, _SUBLANES, bce.shape[-1]), axis=0, keepdims=True)

    # Gram accumulate: contraction over the batch-tile rows (deep MXU K dim).
    g = jax.lax.dot_general(
        t_raw, x_raw, (((0,), (0,)), ((), ())),
        precision=jax.lax.Precision.HIGHEST,
        preferred_element_type=jnp.float32)
    gram_ref[...] += g[None]


def regularized_loss(outputs, targets, co_occurrence_matrix,
                     lambda_reg=LAMBDA_REG):
    """outputs, targets: [B, C] (or [C]); co_occurrence_matrix: [C, C] -> scalar."""
    if outputs.ndim == 1:
        outputs = outputs[None, :]
    if targets.ndim == 1:
        targets = targets[None, :]
    B, C = outputs.shape
    assert targets.shape == (B, C)
    assert co_occurrence_matrix.shape == (C, C)
    itemsize = jnp.dtype(outputs.dtype).itemsize

    # ---- lane-dense canonicalisation --------------------------------------
    # cp: class dim padded so that it either divides 128 (C < 128) or is a
    # multiple of 128.  fold: consecutive batch rows packed into one 128-lane row.
    if C % _LANES == 0:
        cp, fold = C, 1
    elif C < _LANES:
        cp = 1 << max(0, (C - 1).bit_length())       # next pow2 >= C (divides 128)
        fold = _LANES // cp
    else:
        cp, fold = _round_up(C, _LANES), 1
    L = cp * fold                                     # lane width seen by the kernel

    # ---- byte-targeted batch tiling ----------------------------------------
    min_rows = _cdiv(B, fold)                         # rows of the [*, L] view
    gram_bytes = 4 * L * L
    # ~24 MiB of streaming VMEM for 2 inputs x 2 pipeline buffers, minus room
    # for the resident Gram accumulator.
    # TODO(synk): for very large C (> ~2048) tile the Gram over class blocks
    # instead of shrinking the batch tile.
    stream_budget = max(2 << 20, (24 << 20) - 2 * gram_bytes)
    tile = (stream_budget // (2 * 2 * L * itemsize)) // _SUBLANES * _SUBLANES
    tile = max(_SUBLANES, min(tile, _round_up(min_rows, _SUBLANES)))
    n_tiles = _cdiv(min_rows, tile)
    n_cores = 2 if n_tiles >= 2 else 1                # v7x: 2 TCs; harmless on 1-TC
    tiles_per_core = _cdiv(n_tiles, n_cores)
    # Shrink the tile so padding is bounded by one sublane group per core.
    tile = _round_up(_cdiv(min_rows, n_cores * tiles_per_core), _SUBLANES)
    rows_total = n_cores * tiles_per_core * tile

    # ---- zero-pad + reshape to the lane-dense [rows_total, L] view ---------
    b_final = rows_total * fold
    pad_b, pad_c = b_final - B, cp - C
    if pad_b or pad_c:
        outputs = jnp.pad(outputs, ((0, pad_b), (0, pad_c)))
        targets = jnp.pad(targets, ((0, pad_b), (0, pad_c)))
    x2 = outputs.reshape(rows_total, L)
    t2 = targets.reshape(rows_total, L)
    pad_elems = rows_total * L - B * C                # each adds exactly ln(2) to BCE

    vmem_need = (2 * 2 * tile * L * itemsize          # double-buffered input tiles
                 + 2 * gram_bytes                     # gram accumulator (+ writeback)
                 + 2 * 4 * _SUBLANES * L)             # bce accumulator
    vmem_limit = int(min(64 << 20, max(32 << 20, vmem_need + (4 << 20))))

    bce_acc, gram = pl.pallas_call(
        _kernel,
        out_shape=(
            jax.ShapeDtypeStruct((n_cores, _SUBLANES, L), jnp.float32),
            jax.ShapeDtypeStruct((n_cores, L, L), jnp.float32),
        ),
        grid_spec=pltpu.PrefetchScalarGridSpec(
            num_scalar_prefetch=0,
            grid=(n_cores, tiles_per_core),
            in_specs=[
                pl.BlockSpec((tile, L), lambda c, i: (c * tiles_per_core + i, 0)),
                pl.BlockSpec((tile, L), lambda c, i: (c * tiles_per_core + i, 0)),
            ],
            out_specs=(
                pl.BlockSpec((1, _SUBLANES, L), lambda c, i: (c, 0, 0)),
                pl.BlockSpec((1, L, L), lambda c, i: (c, 0, 0)),
            ),
        ),
        compiler_params=pltpu.CompilerParams(
            dimension_semantics=("parallel", "arbitrary"),
            vmem_limit_bytes=vmem_limit,
        ),
        cost_estimate=pl.CostEstimate(
            flops=2 * rows_total * L * L + 8 * rows_total * L,
            transcendentals=2 * rows_total * L,
            bytes_accessed=2 * rows_total * L * itemsize
                           + n_cores * (L * L + _SUBLANES * L) * 4,
        ),
    )(x2, t2)

    # ---- tiny O(C^2) epilogue (plain XLA) -----------------------------------
    base_sum = jnp.sum(bce_acc) - pad_elems * _LN2     # exact zero-padding fix-up
    base_loss = base_sum / (B * C)                     # BCEWithLogits, mean reduction

    cm = co_occurrence_matrix.astype(jnp.float32)
    if pad_c:
        cm = jnp.pad(cm, ((0, pad_c), (0, pad_c)))
    if fold > 1:                                       # block-diag replication undoes
        cm = jnp.kron(jnp.eye(fold, dtype=jnp.float32), cm)   # the lane folding
    reg = jnp.sum(cm * jnp.sum(gram, axis=0)) / B
    return base_loss + lambda_reg * reg


def _reference(outputs, targets, cmat, lambda_reg=LAMBDA_REG):
    x = outputs.astype(jnp.float32)
    t = targets.astype(jnp.float32)
    b = x.shape[0]
    bce = jnp.mean(jnp.maximum(x, 0.0) - x * t
                   + jnp.log(1.0 + jnp.exp(-jnp.abs(x))))
    tx = jnp.sum(t[:, :, None] * x[:, None, :], axis=0)   # exact, matmul-free
    reg = jnp.sum(cmat.astype(jnp.float32) * tx) / b
    return bce + lambda_reg * reg


if __name__ == "__main__":
    B, C = 64, 16   # folds to an 8 x 128 lane-dense view (no padding needed)

    key = jax.random.PRNGKey(0)
    k1, k2, k3 = jax.random.split(key, 3)

    outputs = jax.random.normal(k1, (B, C), dtype=jnp.float32)             # logits
    targets = (jax.random.uniform(k2, (B, C)) > 0.5).astype(jnp.float32)   # multi-label

    # deterministic synthetic co-occurrence matrix (symmetric, non-negative)
    m = jax.random.uniform(k3, (C, C), dtype=jnp.float32)
    co_occurrence = 0.5 * (m + m.T)

    loss = jax.block_until_ready(regularized_loss(outputs, targets, co_occurrence))
    ref = jax.block_until_ready(_reference(outputs, targets, co_occurrence))
    assert jnp.allclose(loss, ref, rtol=1e-4, atol=1e-4), (loss, ref)

    print("KERNEL_OK")
</pallas_src>

<mosaic_0001>
module attributes {stable_mosaic.version = 11 : i64} {
  func.func @_kernel(%arg0: i32, %arg1: i32, %arg2: memref<8x128xf32, #tpu.memory_space<vmem>>, %arg3: memref<8x128xf32, #tpu.memory_space<vmem>>, %arg4: memref<1x8x128xf32, #tpu.memory_space<vmem>>, %arg5: memref<1x128x128xf32, #tpu.memory_space<vmem>>) attributes {dimension_semantics = [#tpu.dimension_semantics<parallel>, #tpu.dimension_semantics<arbitrary>], iteration_bounds = array<i64: 1, 1>, scalar_prefetch = 0 : i64, scratch_operands = 0 : i64, tpu.core_type = #tpu.core_type<tc>, window_params = [{transform_indices = @transform_0, window_bounds = array<i64: 8, 128>}, {transform_indices = @transform_1, window_bounds = array<i64: 8, 128>}, {transform_indices = @transform_2, window_bounds = array<i64: 1, 8, 128>}, {transform_indices = @transform_3, window_bounds = array<i64: 1, 128, 128>}]} {
    %c0_i32 = arith.constant 0 : i32
    %0 = arith.cmpi eq, %arg1, %c0_i32 : i32
    %1 = arith.extui %0 : i1 to i32
    %c0_i32_0 = arith.constant 0 : i32
    %2 = arith.cmpi ne, %1, %c0_i32_0 : i32
    scf.if %2 {
      %cst_20 = arith.constant 0.000000e+00 : f32
      %28 = vector.broadcast %cst_20 : f32 to vector<1x8x128xf32>
      %c0_21 = arith.constant 0 : index
      %c0_22 = arith.constant 0 : index
      %c0_23 = arith.constant 0 : index
      %29 = vector.load %arg4[%c0_21, %c0_22, %c0_23] : memref<1x8x128xf32, #tpu.memory_space<vmem>>, vector<1x8x128xf32>
      tpu.vector_store %arg4[%c0_21, %c0_22, %c0_23], %28 {strides = array<i32>} : memref<1x8x128xf32, #tpu.memory_space<vmem>>, vector<1x8x128xf32>,
      %cst_24 = arith.constant 0.000000e+00 : f32
      %30 = vector.broadcast %cst_24 : f32 to vector<1x128x128xf32>
      %c0_25 = arith.constant 0 : index
      %c0_26 = arith.constant 0 : index
      %c0_27 = arith.constant 0 : index
      %31 = vector.load %arg5[%c0_25, %c0_26, %c0_27] : memref<1x128x128xf32, #tpu.memory_space<vmem>>, vector<1x128x128xf32>
      tpu.vector_store %arg5[%c0_25, %c0_26, %c0_27], %30 {strides = array<i32>} : memref<1x128x128xf32, #tpu.memory_space<vmem>>, vector<1x128x128xf32>,
    } else {
    }
    %c0 = arith.constant 0 : index
    %c0_1 = arith.constant 0 : index
    %3 = vector.load %arg2[%c0, %c0_1] : memref<8x128xf32, #tpu.memory_space<vmem>>, vector<8x128xf32>
    %c0_2 = arith.constant 0 : index
    %c0_3 = arith.constant 0 : index
    %4 = vector.load %arg3[%c0_2, %c0_3] : memref<8x128xf32, #tpu.memory_space<vmem>>, vector<8x128xf32>
    %cst = arith.constant 0.000000e+00 : f32
    %5 = vector.broadcast %cst : f32 to vector<8x128xf32>
    %6 = arith.maximumf %3, %5 : vector<8x128xf32>
    %7 = arith.mulf %3, %4 : vector<8x128xf32>
    %8 = arith.subf %6, %7 : vector<8x128xf32>
    %9 = math.absf %3 : vector<8x128xf32>
    %cst_4 = arith.constant 0.000000e+00 : f32
    %10 = vector.broadcast %cst_4 : f32 to vector<8x128xf32>
    %11 = arith.subf %10, %9 : vector<8x128xf32>
    %12 = math.exp %11 : vector<8x128xf32>
    %cst_5 = arith.constant 1.000000e+00 : f32
    %13 = vector.broadcast %cst_5 : f32 to vector<8x128xf32>
    %14 = arith.addf %13, %12 : vector<8x128xf32>
    %15 = math.log %14 : vector<8x128xf32>
    %16 = arith.addf %8, %15 : vector<8x128xf32>
    %c0_6 = arith.constant 0 : index
    %c0_7 = arith.constant 0 : index
    %c0_8 = arith.constant 0 : index
    %17 = vector.load %arg4[%c0_6, %c0_7, %c0_8] : memref<1x8x128xf32, #tpu.memory_space<vmem>>, vector<1x8x128xf32>
    %18 = vector.shape_cast %16 : vector<8x128xf32> to vector<1x8x128xf32>
    %cst_9 = arith.constant dense<0.000000e+00> : vector<8x128xf32>
    %19 = vector.multi_reduction <add>, %18, %cst_9 [0] : vector<1x8x128xf32> to vector<8x128xf32>
    %20 = vector.shape_cast %19 : vector<8x128xf32> to vector<1x8x128xf32>
    %21 = arith.addf %17, %20 : vector<1x8x128xf32>
    %c0_10 = arith.constant 0 : index
    %c0_11 = arith.constant 0 : index
    %c0_12 = arith.constant 0 : index
    %22 = vector.load %arg4[%c0_10, %c0_11, %c0_12] : memref<1x8x128xf32, #tpu.memory_space<vmem>>, vector<1x8x128xf32>
    tpu.vector_store %arg4[%c0_10, %c0_11, %c0_12], %21 {strides = array<i32>} : memref<1x8x128xf32, #tpu.memory_space<vmem>>, vector<1x8x128xf32>,
    %cst_13 = arith.constant dense<0.000000e+00> : vector<128x128xf32>
    %23 = tpu.matmul %4, %3, %cst_13 {dimension_numbers = #tpu.dot_dimension_numbers<[0], [0], [1], [1], [0, 1, 1, 1], [], []>, precision = #tpu.contract_precision<fp32>} : vector<8x128xf32>, vector<8x128xf32>, vector<128x128xf32> -> vector<128x128xf32>
    %c0_14 = arith.constant 0 : index
    %c0_15 = arith.constant 0 : index
    %c0_16 = arith.constant 0 : index
    %24 = vector.load %arg5[%c0_14, %c0_15, %c0_16] : memref<1x128x128xf32, #tpu.memory_space<vmem>>, vector<1x128x128xf32>
    %25 = vector.shape_cast %23 : vector<128x128xf32> to vector<1x128x128xf32>
    %26 = arith.addf %24, %25 : vector<1x128x128xf32>
    %c0_17 = arith.constant 0 : index
    %c0_18 = arith.constant 0 : index
    %c0_19 = arith.constant 0 : index
    %27 = vector.load %arg5[%c0_17, %c0_18, %c0_19] : memref<1x128x128xf32, #tpu.memory_space<vmem>>, vector<1x128x128xf32>
    tpu.vector_store %arg5[%c0_17, %c0_18, %c0_19], %26 {strides = array<i32>} : memref<1x128x128xf32, #tpu.memory_space<vmem>>, vector<1x128x128xf32>,
    return
  }
  func.func @transform_0(%arg0: i32, %arg1: i32) -> (i32, i32) {
    %c1_i32 = arith.constant 1 : i32
    %0 = arith.muli %arg0, %c1_i32 : i32
    %1 = arith.addi %0, %arg1 : i32
    %c0_i32 = arith.constant 0 : i32
    %c0_i32_0 = arith.constant 0 : i32
    return %1, %c0_i32 : i32, i32
  }
  func.func @transform_1(%arg0: i32, %arg1: i32) -> (i32, i32) {
    %c1_i32 = arith.constant 1 : i32
    %0 = arith.muli %arg0, %c1_i32 : i32
    %1 = arith.addi %0, %arg1 : i32
    %c0_i32 = arith.constant 0 : i32
    %c0_i32_0 = arith.constant 0 : i32
    return %1, %c0_i32 : i32, i32
  }
  func.func @transform_2(%arg0: i32, %arg1: i32) -> (i32, i32, i32) {
    %c0_i32 = arith.constant 0 : i32
    %c0_i32_0 = arith.constant 0 : i32
    %c0_i32_1 = arith.constant 0 : i32
    return %arg0, %c0_i32, %c0_i32_0 : i32, i32, i32
  }
  func.func @transform_3(%arg0: i32, %arg1: i32) -> (i32, i32, i32) {
    %c0_i32 = arith.constant 0 : i32
    %c0_i32_0 = arith.constant 0 : i32
    %c0_i32_1 = arith.constant 0 : i32
    return %arg0, %c0_i32, %c0_i32_0 : i32, i32, i32
  }
}

</mosaic_0001>

<bundles_post_ra>
// kernel: tpu_custom_call.1
= control target key start
LH: loop header
LB: loop body
LE: loop exit
PB: predicated region body
PF: predicated region fallthrough
CT: control target
= control target key end

     0   :  { %9 = vsyncpa [#allocation3], 0  ;;  %s2108_s0 = inlined_call_operand.hbm [shape: f32[8,128], index: 0, kind: input, shape index: {}]   ;;  %s2109_s1 = inlined_call_operand.hbm [shape: f32[8,128], index: 1, kind: input, shape index: {}]   ;;  %s2110_s2 = inlined_call_operand.hbm [shape: f32[1,8,128], index: 2, kind: output, shape index: {0}]   ;;  %s2111_s3 = inlined_call_operand.hbm [shape: f32[1,128,128], index: 3, kind: output, shape index: {1}]  }
   0x1   :  { %10 = vsyncpa [#allocation6], 0 }
   0x2   :  { %11 = vsyncpa [#allocation4], 0 }
   0x3   :  { %12 = vsyncpa [#allocation9], 0  ;;  %s1694_s12 = smov [#allocation2]   ;;  %s1695_s14 = smov [#allocation5]  }
   0x4   :  { %s22_s13 = sshll.u32 %s1694_s12, 4  ;;  %s35_s15 = sshll.u32 %s1695_s14, 4  ;;  %s23_s13 = int_to_ptr.vmem [resolvable:$true] %s22_s13  ;;  %s36_s15 = int_to_ptr.vmem [resolvable:$true] %s35_s15 }
   0x5   :  { %s1614_s16 = scalar_lea.vmem %s23_s13, 128  ;;  %p1619_p1 = scmp.lt.s32.totalorder %s23_s13, %s23_s13 }
   0x6   :  { %p1615_p0 = scmp.ne.s32.totalorder %s23_s13, %s1614_s16  ;;  %p1620_p2 = scmp.lt.s32.totalorder %s1614_s16, %s1614_s16 }
   0x8   :  { %p1621_p3 = por %p1620_p2, %p1619_p1 }
   0xa   :  { %p1622_p4 = pnand %p1621_p3, %p1615_p0 }
   0xc   :  { %1625 = shalt.err (!%p1622_p4)
}
   0xd   :  { %25 = dma.hbm_to_vmem [thread:$0]  %s2108_s0, 128, %s23_s13, [#allocation3]  }
   0xe   :  { %s1634_s19 = scalar_lea.vmem %s36_s15, 128  ;;  %p1639_p6 = scmp.lt.s32.totalorder %s36_s15, %s36_s15 }
   0xf   :  { %p1635_p5 = scmp.ne.s32.totalorder %s36_s15, %s1634_s19  ;;  %p1640_p7 = scmp.lt.s32.totalorder %s1634_s19, %s1634_s19 }
  0x11   :  { %p1641_p8 = por %p1640_p7, %p1639_p6 }
  0x13   :  { %p1642_p9 = pnand %p1641_p8, %p1635_p5 }
  0x15   :  { %1645 = shalt.err (!%p1642_p9)
}
  0x16   :  { %38 = dma.hbm_to_vmem [thread:$0]  %s2109_s1, 128, %s36_s15, [#allocation6]  }
  0x17   :  { %1686 = dma.done.wait [#allocation3], 128  }
  0x18   :  { %1687 = vsyncadd [#allocation3], 4294967168 }
  0x19   :  { %1688 = dma.done.wait [#allocation6], 128  }
  0x1a   :  { %1689 = vsyncadd [#allocation6], 4294967168  ;;  %v69_v0 = vld [vmem:[#allocation5] sm:$0xff]  ;;  %v68_v1 = vld [vmem:[#allocation2] sm:$0xff]  ;;  %vm117_vm0 = vcmask 64512   ;;  %s1696_s0 = smov [#allocation7]  }
  0x1b   :  { %85 = vxpose.xlu0.b32.start.end [1/1] (short) %v69_v0, 128  ;;  %v70_v2 = vmax.f32 %v68_v1, 0.0  ;;  %v71_v3 = vmul.f32 %v69_v0, %v68_v1  ;;  %v73_v4 = vand.u32 2147483647, %v68_v1  ;;  %v1726_v5 = vand.u32 4294901760, %v68_v1  ;;  %s1311_s1 = sshll.u32 %s1696_s0, 4  ;;  %s1312_s1 = int_to_ptr.vmem [resolvable:$true] %s1311_s1 }
  0x1c   :  { %s1646_s22 = scalar_lea.vmem %s1312_s1, 128  ;;  %p1651_p11 = scmp.lt.s32.totalorder %s1312_s1, %s1312_s1 }
  0x1d   :  { %v72_v6 = vsub.f32 %v70_v2, %v71_v3  ;;  %v74_v7 = vsub.f32 0.0, %v73_v4  ;;  %v424_v8 = vsub.f32 %v68_v1, %v1726_v5  ;;  %1439 = vmatprep.subr.mxu0 %v1726_v5  ;;  %p1647_p10 = scmp.ne.s32.totalorder %s1312_s1, %s1646_s22  ;;  %p1652_p12 = scmp.lt.s32.totalorder %s1646_s22, %s1646_s22 }
  0x1e   :  { %1440 = vmatpush3.msra.mxu0 %v1726_v5 }
  0x1f   :  { %v75_v9 = vmul.f32 1.442695, %v74_v7  ;;  %v1731_v10 = vand.u32 4294901760, %v424_v8  ;;  %1491 = vmatprep.subr.mxu0 %v424_v8  ;;  %p1653_p13 = por %p1652_p12, %p1651_p11 }
  0x21   :  { %1602 = vpow2.f32 %v75_v9  ;;  %v426_v11 = vsub.f32 %v424_v8, %v1731_v10  ;;  %p1654_p0 = pnand %p1653_p13, %p1647_p10 }
  0x23   :  { %v427_v12 = vand.u32 4294901760, %v426_v11 }
  0x25   :  { %1465 = vmatprep.subr.mxu1 %v427_v12 }
  0x26   :  { %1466 = vmatpush3.msra.mxu1 %v427_v12 }
  0x27   :  { %1517 = vmatprep.subr.mxu1 %v1726_v5 }
  0x2e   :  { %v1603_v13 = vpop.eup %1602 }
  0x2f   :  { %v77_v14 = vadd.f32 1.0, %v1603_v13 }
  0x31   :  { %1604 = vlog2.f32 %v77_v14 }
  0x3e   :  { %v1605_v15 = vpop.eup %1604 }
  0x3f   :  { %v79_v16 = vmul.f32 0.6931472, %v1605_v15 }
  0x41   :  { %v1735_v17 = vadd.f32 %v79_v16, %v72_v6 }
  0x43   :  { %84 = vst [vmem:[#allocation7] sm:$0xff] %v1735_v17 }
  0x97   :  { %v101_v18 = vpop.trf.xlu0 }
  0x98   :  { %v119_v19 = vsel %vm117_vm0, %v101_v18, 0 }
  0x99   :  { %v1738_v20 = vand.u32 4294901760, %v119_v19 }
  0x9b   :  { %v1741_v21 = vsub.f32 %v119_v19, %v1738_v20  ;;  %1467 = vmatprep.mubr.f32.mxu1 %v1738_v20  ;;  %v102_v22 = vpop.trf.xlu0 }
  0x9c   :  { %v122_v23 = vsel %vm117_vm0, %v102_v22, 0 }
  0x9d   :  { %v1745_v24 = vand.u32 4294901760, %v122_v23  ;;  %v234_v25 = vand.u32 4294901760, %v1741_v21 }
  0x9f   :  { %v1749_v26 = vsub.f32 %v122_v23, %v1745_v24  ;;  %v103_v27 = vpop.trf.xlu0  ;;  %1468 = vmatmul.mubr.f32.vlgmr.msra.gmra.mxu1 %v1745_v24  ;;  %v235_v28 = vsub.f32 %v1741_v21, %v234_v25 }
  0xa0   :  { %v125_v29 = vsel %vm117_vm0, %v103_v27, 0  ;;  %1518 = vmatpush3.msra.mxu1 %v1726_v5 }
  0xa1   :  { %v244_v30 = vand.u32 4294901760, %v1749_v26  ;;  %v1758_v31 = vand.u32 4294901760, %v125_v29  ;;  %v236_v32 = vand.u32 4294901760, %v235_v28  ;;  %1569 = vmatprep.subr.mxu1 %v1726_v5 }
  0xa3   :  { %v1762_v33 = vsub.f32 %v125_v29, %v1758_v31  ;;  %1441 = vmatprep.mubr.f32.mxu0 %v236_v32  ;;  %v104_v34 = vpop.trf.xlu0  ;;  %1470 = vmatprep.mubr.f32.mxu1 %v1758_v31  ;;  %v245_v35 = vsub.f32 %v1749_v26, %v244_v30 }
  0xa4   :  { %v128_v36 = vsel %vm117_vm0, %v104_v34, 0 }
  0xa5   :  { %v254_v37 = vand.u32 4294901760, %v1762_v33  ;;  %v1770_v38 = vand.u32 4294901760, %v128_v36  ;;  %v246_v39 = vand.u32 4294901760, %v245_v35 }
  0xa7   :  { %v1773_v40 = vsub.f32 %v128_v36, %v1770_v38  ;;  %v105_v41 = vpop.trf.xlu0  ;;  %1442 = vmatmul.mubr.f32.vlgmr.msra.gmra.mxu0 %v246_v39  ;;  %1471 = vmatmul.mubr.f32.gmra.mxu1 %v1770_v38  ;;  %v255_v42 = vsub.f32 %v1762_v33, %v254_v37 }
  0xa8   :  { %v131_v43 = vsel %vm117_vm0, %v105_v41, 0  ;;  %1492 = vmatpush3.msra.mxu0 %v424_v8 }
  0xa9   :  { %v264_v44 = vand.u32 4294901760, %v1773_v40  ;;  %v1781_v45 = vand.u32 4294901760, %v131_v43  ;;  %v256_v46 = vand.u32 4294901760, %v255_v42  ;;  %1543 = vmatprep.subr.mxu0 %v1731_v10 }
  0xab   :  { %v1785_v47 = vsub.f32 %v131_v43, %v1781_v45  ;;  %v106_v48 = vpop.trf.xlu0  ;;  %1444 = vmatprep.mubr.f32.mxu0 %v256_v46  ;;  %1473 = vmatprep.mubr.f32.mxu1 %v1781_v45  ;;  %v265_v49 = vsub.f32 %v1773_v40, %v264_v44 }
  0xac   :  { %v134_v50 = vsel %vm117_vm0, %v106_v48, 0 }
  0xad   :  { %v274_v51 = vand.u32 4294901760, %v1785_v47  ;;  %v1793_v52 = vand.u32 4294901760, %v134_v50  ;;  %v266_v53 = vand.u32 4294901760, %v265_v49 }
  0xaf   :  { %v1796_v54 = vsub.f32 %v134_v50, %v1793_v52  ;;  %v107_v55 = vpop.trf.xlu0  ;;  %1445 = vmatmul.mubr.f32.gmra.mxu0 %v266_v53  ;;  %1474 = vmatmul.mubr.f32.gmra.mxu1 %v1793_v52  ;;  %v275_v56 = vsub.f32 %v1785_v47, %v274_v51 }
  0xb0   :  { %v137_v57 = vsel %vm117_vm0, %v107_v55, 0 }
  0xb1   :  { %v284_v58 = vand.u32 4294901760, %v1796_v54  ;;  %v1804_v59 = vand.u32 4294901760, %v137_v57  ;;  %v276_v60 = vand.u32 4294901760, %v275_v56 }
  0xb3   :  { %v1807_v61 = vsub.f32 %v137_v57, %v1804_v59  ;;  %v108_v62 = vpop.trf.xlu0  ;;  %1447 = vmatprep.mubr.f32.mxu0 %v276_v60  ;;  %1476 = vmatprep.mubr.f32.mxu1 %v1804_v59  ;;  %v285_v63 = vsub.f32 %v1796_v54, %v284_v58 }
  0xb4   :  { %v140_v0 = vsel %vm117_vm0, %v108_v62, 0 }
  0xb5   :  { %v294_v1 = vand.u32 4294901760, %v1807_v61  ;;  %v1815_v2 = vand.u32 4294901760, %v140_v0  ;;  %v286_v3 = vand.u32 4294901760, %v285_v63 }
  0xb7   :  { %v1818_v4 = vsub.f32 %v140_v0, %v1815_v2  ;;  %v109_v6 = vpop.trf.xlu0  ;;  %1448 = vmatmul.mubr.f32.gmra.mxu0 %v286_v3  ;;  %1477 = vmatmul.mubr.f32.gmra.mxu1 %v1815_v2  ;;  %v295_v7 = vsub.f32 %v1807_v61, %v294_v1 }
  0xb8   :  { %v143_v8 = vsel %vm117_vm0, %v109_v6, 0 }
  0xb9   :  { %v304_v9 = vand.u32 4294901760, %v1818_v4  ;;  %v1826_v11 = vand.u32 4294901760, %v143_v8  ;;  %v296_v12 = vand.u32 4294901760, %v295_v7 }
  0xbb   :  { %v1829_v13 = vsub.f32 %v143_v8, %v1826_v11  ;;  %v110_v14 = vpop.trf.xlu0  ;;  %1450 = vmatprep.mubr.f32.mxu0 %v296_v12  ;;  %1479 = vmatprep.mubr.f32.mxu1 %v1826_v11  ;;  %v305_v15 = vsub.f32 %v1818_v4, %v304_v9 }
  0xbc   :  { %v146_v16 = vsel %vm117_vm0, %v110_v14, 0 }
  0xbd   :  { %v314_v18 = vand.u32 4294901760, %v1829_v13  ;;  %v1837_v19 = vand.u32 4294901760, %v146_v16  ;;  %v306_v22 = vand.u32 4294901760, %v305_v15 }
  0xbf   :  { %v1840_v23 = vsub.f32 %v146_v16, %v1837_v19  ;;  %v111_v27 = vpop.trf.xlu0  ;;  %1451 = vmatmul.mubr.f32.gmra.mxu0 %v306_v22  ;;  %1480 = vmatmul.mubr.f32.gmra.mxu1 %v1837_v19  ;;  %v315_v28 = vsub.f32 %v1829_v13, %v314_v18 }
  0xc0   :  { %v149_v29 = vsel %vm117_vm0, %v111_v27, 0 }
  0xc1   :  { %v324_v32 = vand.u32 4294901760, %v1840_v23  ;;  %v1848_v34 = vand.u32 4294901760, %v149_v29  ;;  %v316_v35 = vand.u32 4294901760, %v315_v28 }
  0xc3   :  { %v1851_v36 = vsub.f32 %v149_v29, %v1848_v34  ;;  %v112_v39 = vpop.trf.xlu0  ;;  %1453 = vmatprep.mubr.f32.mxu0 %v316_v35  ;;  %1482 = vmatprep.mubr.f32.mxu1 %v1848_v34  ;;  %v325_v41 = vsub.f32 %v1840_v23, %v324_v32 }
  0xc4   :  { %v152_v42 = vsel %vm117_vm0, %v112_v39, 0 }
  0xc5   :  { %v334_v43 = vand.u32 4294901760, %v1851_v36  ;;  %v1859_v46 = vand.u32 4294901760, %v152_v42  ;;  %v326_v48 = vand.u32 4294901760, %v325_v41 }
  0xc7   :  { %v1862_v49 = vsub.f32 %v152_v42, %v1859_v46  ;;  %v113_v50 = vpop.trf.xlu0  ;;  %1454 = vmatmul.mubr.f32.gmra.mxu0 %v326_v48  ;;  %1483 = vmatmul.mubr.f32.gmra.mxu1 %v1859_v46  ;;  %v335_v53 = vsub.f32 %v1851_v36, %v334_v43 }
  0xc8   :  { %v155_v55 = vsel %vm117_vm0, %v113_v50, 0 }
  0xc9   :  { %v344_v56 = vand.u32 4294901760, %v1862_v49  ;;  %v1870_v57 = vand.u32 4294901760, %v155_v55  ;;  %v336_v60 = vand.u32 4294901760, %v335_v53 }
  0xcb   :  { %v1873_v62 = vsub.f32 %v155_v55, %v1870_v57  ;;  %v114_v63 = vpop.trf.xlu0  ;;  %1456 = vmatprep.mubr.f32.mxu0 %v336_v60  ;;  %1485 = vmatprep.mubr.f32.mxu1 %v1870_v57  ;;  %v345_v0 = vsub.f32 %v1862_v49, %v344_v56 }
  0xcc   :  { %v158_v3 = vsel %vm117_vm0, %v114_v63, 0 }
  0xcd   :  { %v354_v6 = vand.u32 4294901760, %v1873_v62  ;;  %v1879_v7 = vand.u32 4294901760, %v158_v3  ;;  %v346_v8 = vand.u32 4294901760, %v345_v0 }
  0xcf   :  { %v363_v12 = vsub.f32 %v158_v3, %v1879_v7  ;;  %v115_v14 = vpop.trf.xlu0  ;;  %1457 = vmatmul.mubr.f32.gmra.mxu0 %v346_v8  ;;  %1486 = vmatmul.mubr.f32.gmra.mxu1 %v1879_v7  ;;  %v355_v15 = vsub.f32 %v1873_v62, %v354_v6 }
  0xd0   :  { %v161_v16 = vsel %vm117_vm0, %v115_v14, 0 }
  0xd1   :  { %v364_v22 = vand.u32 4294901760, %v363_v12  ;;  %v1885_v27 = vand.u32 4294901760, %v161_v16  ;;  %v356_v28 = vand.u32 4294901760, %v355_v15 }
  0xd3   :  { %v373_v29 = vsub.f32 %v161_v16, %v1885_v27  ;;  %v116_v35 = vpop.trf.xlu0  ;;  %1459 = vmatprep.mubr.f32.mxu0 %v356_v28  ;;  %1488 = vmatprep.mubr.f32.mxu1 %v1885_v27  ;;  %v365_v39 = vsub.f32 %v363_v12, %v364_v22 }
  0xd4   :  { %v164_v41 = vsel %vm117_vm0, %v116_v35, 0 }
  0xd5   :  { %v374_v42 = vand.u32 4294901760, %v373_v29  ;;  %v1890_v48 = vand.u32 4294901760, %v164_v41  ;;  %v366_v50 = vand.u32 4294901760, %v365_v39 }
  0xd7   :  { %v383_v53 = vsub.f32 %v164_v41, %v1890_v48  ;;  %1460 = vmatmul.mubr.f32.gmra.mxu0 %v366_v50  ;;  %1489 = vmatmul.mubr.f32.gmra.mxu1 %v1890_v48  ;;  %v375_v55 = vsub.f32 %v373_v29, %v374_v42 }
  0xd8   :  { %1519 = vmatprep.mubr.f32.mxu1 %v234_v25 }
  0xd9   :  { %v384_v60 = vand.u32 4294901760, %v383_v53  ;;  %v376_v63 = vand.u32 4294901760, %v375_v55 }
  0xdb   :  { %1462 = vmatprep.mubr.f32.mxu0 %v376_v63  ;;  %1520 = vmatmul.mubr.f32.vlgmr.msra.gmra.mxu1 %v244_v30  ;;  %v385_v0 = vsub.f32 %v383_v53, %v384_v60 }
  0xdc   :  { %1522 = vmatprep.mubr.f32.mxu1 %v254_v37  ;;  %1570 = vmatpush3.msra.mxu1 %v1726_v5 }
  0xdd   :  { %v386_v3 = vand.u32 4294901760, %v385_v0 }
  0xdf   :  { %1463 = vmatmul.mubr.f32.gmra.mxu0 %v386_v3  ;;  %1523 = vmatmul.mubr.f32.gmra.mxu1 %v264_v44 }
  0xe0   :  { %1493 = vmatprep.mubr.f32.mxu0 %v1741_v21  ;;  %1525 = vmatprep.mubr.f32.mxu1 %v274_v51 }
  0xe3   :  { %1494 = vmatmul.mubr.f32.vlgmr.msra.gmra.mxu0 %v1749_v26  ;;  %1526 = vmatmul.mubr.f32.gmra.mxu1 %v284_v58 }
  0xe4   :  { %1544 = vmatpush3.msra.mxu0 %v1731_v10  ;;  %1496 = vmatprep.mubr.f32.mxu0 %v1762_v33 }
  0xe5   :  { %1528 = vmatprep.mubr.f32.mxu1 %v294_v1 }
  0xe7   :  { %1497 = vmatmul.mubr.f32.gmra.mxu0 %v1773_v40  ;;  %1529 = vmatmul.mubr.f32.gmra.mxu1 %v304_v9 }
  0xe8   :  { %1499 = vmatprep.mubr.f32.mxu0 %v1785_v47  ;;  %1531 = vmatprep.mubr.f32.mxu1 %v314_v18 }
  0xeb   :  { %1500 = vmatmul.mubr.f32.gmra.mxu0 %v1796_v54  ;;  %1532 = vmatmul.mubr.f32.gmra.mxu1 %v324_v32 }
  0xec   :  { %1502 = vmatprep.mubr.f32.mxu0 %v1807_v61  ;;  %1534 = vmatprep.mubr.f32.mxu1 %v334_v43 }
  0xef   :  { %1503 = vmatmul.mubr.f32.gmra.mxu0 %v1818_v4  ;;  %1535 = vmatmul.mubr.f32.gmra.mxu1 %v344_v56 }
  0xf0   :  { %1505 = vmatprep.mubr.f32.mxu0 %v1829_v13  ;;  %1537 = vmatprep.mubr.f32.mxu1 %v354_v6 }
  0xf3   :  { %1506 = vmatmul.mubr.f32.gmra.mxu0 %v1840_v23  ;;  %1538 = vmatmul.mubr.f32.gmra.mxu1 %v364_v22 }
  0xf4   :  { %1508 = vmatprep.mubr.f32.mxu0 %v1851_v36  ;;  %1540 = vmatprep.mubr.f32.mxu1 %v374_v42 }
  0xf7   :  { %1509 = vmatmul.mubr.f32.gmra.mxu0 %v1862_v49  ;;  %1541 = vmatmul.mubr.f32.gmra.mxu1 %v384_v60 }
  0xf8   :  { %1511 = vmatprep.mubr.f32.mxu0 %v1873_v62  ;;  %1571 = vmatprep.mubr.f32.mxu1 %v1738_v20 }
  0xfb   :  { %1512 = vmatmul.mubr.f32.gmra.mxu0 %v363_v12  ;;  %1572 = vmatmul.mubr.f32.vlgmr.msra.gmra.mxu1 %v1745_v24 }
  0xfc   :  { %1514 = vmatprep.mubr.f32.mxu0 %v373_v29  ;;  %1574 = vmatprep.mubr.f32.mxu1 %v1758_v31 }
  0xff   :  { %1515 = vmatmul.mubr.f32.gmra.mxu0 %v383_v53  ;;  %1575 = vmatmul.mubr.f32.gmra.mxu1 %v1770_v38 }
 0x100   :  { %1545 = vmatprep.mubr.f32.mxu0 %v1738_v20  ;;  %1577 = vmatprep.mubr.f32.mxu1 %v1781_v45 }
 0x103   :  { %1546 = vmatmul.mubr.f32.vlgmr.msra.gmra.mxu0 %v1745_v24  ;;  %1578 = vmatmul.mubr.f32.gmra.mxu1 %v1793_v52 }
 0x104   :  { %1548 = vmatprep.mubr.f32.mxu0 %v1758_v31  ;;  %1580 = vmatprep.mubr.f32.mxu1 %v1804_v59 }
 0x107   :  { %1549 = vmatmul.mubr.f32.gmra.mxu0 %v1770_v38  ;;  %1581 = vmatmul.mubr.f32.gmra.mxu1 %v1815_v2 }
 0x108   :  { %1551 = vmatprep.mubr.f32.mxu0 %v1781_v45  ;;  %1583 = vmatprep.mubr.f32.mxu1 %v1826_v11 }
 0x10b   :  { %1552 = vmatmul.mubr.f32.gmra.mxu0 %v1793_v52  ;;  %1584 = vmatmul.mubr.f32.gmra.mxu1 %v1837_v19 }
 0x10c   :  { %1554 = vmatprep.mubr.f32.mxu0 %v1804_v59  ;;  %1586 = vmatprep.mubr.f32.mxu1 %v1848_v34 }
 0x10f   :  { %1555 = vmatmul.mubr.f32.gmra.mxu0 %v1815_v2  ;;  %1587 = vmatmul.mubr.f32.gmra.mxu1 %v1859_v46 }
 0x110   :  { %1557 = vmatprep.mubr.f32.mxu0 %v1826_v11  ;;  %1589 = vmatprep.mubr.f32.mxu1 %v1870_v57 }
 0x113   :  { %1558 = vmatmul.mubr.f32.gmra.mxu0 %v1837_v19  ;;  %1590 = vmatmul.mubr.f32.gmra.mxu1 %v1879_v7 }
 0x114   :  { %1560 = vmatprep.mubr.f32.mxu0 %v1848_v34  ;;  %1592 = vmatprep.mubr.f32.mxu1 %v1885_v27 }
 0x117   :  { %1561 = vmatmul.mubr.f32.gmra.mxu0 %v1859_v46  ;;  %1593 = vmatmul.mubr.f32.gmra.mxu1 %v1890_v48 }
 0x118   :  { %1563 = vmatprep.mubr.f32.mxu0 %v1870_v57 }
 0x11b   :  { %1564 = vmatmul.mubr.f32.gmra.mxu0 %v1879_v7 }
 0x11c   :  { %1566 = vmatprep.mubr.f32.mxu0 %v1885_v27 }
 0x11f   :  { %1567 = vmatmul.mubr.f32.gmra.mxu0 %v1890_v48 }
 0x120   :  { %1657 = shalt.err (!%p1654_p0)
}
 0x121   :  { %1314 = dma.vmem_to_hbm [thread:$0]  %s1312_s1, 128, %s2110_s2, [#allocation4]  }
 0x122   :  { %s1697_s2 = smov [#allocation8]  }
 0x123   :  { %s1320_s25 = sshll.u32 %s1697_s2, 4  ;;  %s1321_s25 = int_to_ptr.vmem [resolvable:$true] %s1320_s25 }
 0x124   :  { %s1666_s26 = scalar_lea.vmem %s1321_s25, 2048  ;;  %p1671_p2 = scmp.lt.s32.totalorder %s1321_s25, %s1321_s25 }
 0x125   :  { %p1667_p1 = scmp.ne.s32.totalorder %s1321_s25, %s1666_s26  ;;  %p1672_p3 = scmp.lt.s32.totalorder %s1666_s26, %s1666_s26 }
 0x127   :  { %p1673_p4 = por %p1672_p3, %p1671_p2 }
 0x129   :  { %p1674_p5 = pnand %p1673_p4, %p1667_p1 }
 0x15f   :  { %v1469_v5 = vpop.f32.mrf.mxu1 }
 0x161   :  { %v1967_v10 = vpop.f32.mrf.mxu1 }
 0x167   :  { %v1969_v20 = vpop.f32.mrf.mxu1  ;;  %v1443_v21 = vpop.f32.mrf.mxu0 }
 0x168   :  { %v471_v0 = vadd.f32 %v1469_v5, %v1443_v21 }
 0x169   :  { %v1971_v24 = vpop.f32.mrf.mxu1  ;;  %v238_v17 = vpop.f32.mrf.mxu0 }
 0x16f   :  { %v1973_v25 = vpop.f32.mrf.mxu1  ;;  %v1446_v26 = vpop.f32.mrf.mxu0 }
 0x171   :  { %v1975_v30 = vpop.f32.mrf.mxu1  ;;  %v1977_v31 = vpop.f32.mrf.mxu0 }
 0x177   :  { %v1979_v33 = vpop.f32.mrf.mxu1  ;;  %v1981_v37 = vpop.f32.mrf.mxu0 }
 0x178   :  { %v495_v21 = vadd.f32 %v1973_v25, %v1981_v37 }
 0x179   :  { %v1983_v38 = vpop.f32.mrf.mxu1  ;;  %v1985_v40 = vpop.f32.mrf.mxu0 }
 0x17f   :  { %v1987_v44 = vpop.f32.mrf.mxu1  ;;  %v1989_v45 = vpop.f32.mrf.mxu0 }
 0x181   :  { %v1991_v47 = vpop.f32.mrf.mxu1  ;;  %v1993_v51 = vpop.f32.mrf.mxu0 }
 0x187   :  { %v1995_v52 = vpop.f32.mrf.mxu1  ;;  %v1997_v54 = vpop.f32.mrf.mxu0 }
 0x189   :  { %v1999_v58 = vpop.f32.mrf.mxu1  ;;  %v2001_v59 = vpop.f32.mrf.mxu0 }
 0x18f   :  { %v2003_v61 = vpop.f32.mrf.mxu1  ;;  %v2005_v1 = vpop.f32.mrf.mxu0 }
 0x191   :  { %v2007_v2 = vpop.f32.mrf.mxu1  ;;  %v2009_v4 = vpop.f32.mrf.mxu0 }
 0x192   :  { %2112 = vst [vmem:[#allocation14_spill] sm:$0xff] %v2007_v2 }
 0x197   :  { %v2011_v9 = vpop.f32.mrf.mxu1  ;;  %v2013_v11 = vpop.f32.mrf.mxu0 }
 0x198   :  { %2113 = vst [vmem:[#allocation15_spill] sm:$0xff] %v2011_v9  ;;  %v483_v9 = vadd.f32 %v1969_v20, %v1446_v26  ;;  %v489_v20 = vadd.f32 %v1975_v30, %v1985_v40 }
 0x199   :  { %v2015_v13 = vpop.f32.mrf.mxu1  ;;  %v2017_v19 = vpop.f32.mrf.mxu0 }
 0x19a   :  { %2114 = vst [vmem:[#allocation16_spill] sm:$0xff] %v2015_v13 }
 0x19b   :  { %v1521_v18 = vpop.f32.mrf.mxu1 }
 0x19d   :  { %v807_v23 = vpop.f32.mrf.mxu1 }
 0x19f   :  { %v2019_v32 = vpop.f32.mrf.mxu0  ;;  %v1524_v34 = vpop.f32.mrf.mxu1 }
 0x1a0   :  { %2115 = vst [vmem:[#allocation17_spill] sm:$0xff] %v2019_v32 }
 0x1a1   :  { %v2021_v36 = vpop.f32.mrf.mxu0  ;;  %v823_v43 = vpop.f32.mrf.mxu1 }
 0x1a2   :  { %2116 = vst [vmem:[#allocation18_spill] sm:$0xff] %v2021_v36 }
 0x1a3   :  { %v1495_v46 = vpop.f32.mrf.mxu0  ;;  %v1527_v49 = vpop.f32.mrf.mxu1 }
 0x1a4   :  { %v636_v36 = vadd.f32 %v1495_v46, %v471_v0 }
 0x1a5   :  { %v628_v56 = vpop.f32.mrf.mxu0  ;;  %v2023_v57 = vpop.f32.mrf.mxu1 }
 0x1a6   :  { %v816_v5 = vadd.f32 %v1521_v18, %v636_v36 }
 0x1a7   :  { %v1498_v62 = vpop.f32.mrf.mxu0  ;;  %v2025_v6 = vpop.f32.mrf.mxu1 }
 0x1a9   :  { %v642_v7 = vpop.f32.mrf.mxu0  ;;  %v2027_v8 = vpop.f32.mrf.mxu1 }
 0x1ab   :  { %v1501_v12 = vpop.f32.mrf.mxu0  ;;  %v2029_v14 = vpop.f32.mrf.mxu1 }
 0x1ac   :  { %v664_v26 = vadd.f32 %v1501_v12, %v495_v21 }
 0x1ad   :  { %v656_v15 = vpop.f32.mrf.mxu0  ;;  %v2031_v16 = vpop.f32.mrf.mxu1 }
 0x1ae   :  { %v848_v40 = vadd.f32 %v1527_v49, %v664_v26  ;;  %v2131_v26 = vld [vmem:[#allocation15_spill] sm:$0xff] }
 0x1af   :  { %v1504_v22 = vpop.f32.mrf.mxu0  ;;  %v2033_v27 = vpop.f32.mrf.mxu1 }
 0x1b0   :  { %2117 = vst [vmem:[#allocation19_spill] sm:$0xff] %v2033_v27 }
 0x1b1   :  { %v670_v28 = vpop.f32.mrf.mxu0  ;;  %v2035_v29 = vpop.f32.mrf.mxu1 }
 0x1b2   :  { %2118 = vst [vmem:[#allocation20_spill] sm:$0xff] %v2035_v29 }
 0x1b3   :  { %v1507_v35 = vpop.f32.mrf.mxu0  ;;  %v2037_v39 = vpop.f32.mrf.mxu1 }
 0x1b4   :  { %2119 = vst [vmem:[#allocation21_spill] sm:$0xff] %v2037_v39  ;;  %v465_v39 = vadd.f32 %v1967_v10, %v238_v17 }
 0x1b5   :  { %v2039_v41 = vpop.f32.mrf.mxu0  ;;  %v2041_v42 = vpop.f32.mrf.mxu1 }
 0x1b6   :  { %2120 = vst [vmem:[#allocation22_spill] sm:$0xff] %v2041_v42 }
 0x1b7   :  { %v2043_v48 = vpop.f32.mrf.mxu0  ;;  %v2045_v50 = vpop.f32.mrf.mxu1 }
 0x1b8   :  { %2121 = vst [vmem:[#allocation23_spill] sm:$0xff] %v2045_v50  ;;  %v629_v50 = vadd.f32 %v628_v56, %v465_v39 }
 0x1b9   :  { %v2047_v53 = vpop.f32.mrf.mxu0  ;;  %v2049_v55 = vpop.f32.mrf.mxu1 }
 0x1ba   :  { %2122 = vst [vmem:[#allocation24_spill] sm:$0xff] %v2049_v55  ;;  %v477_v55 = vadd.f32 %v1971_v24, %v1977_v31  ;;  %v808_v0 = vadd.f32 %v807_v23, %v629_v50  ;;  %v507_v24 = vadd.f32 %v1979_v33, %v1989_v45  ;;  %v657_v31 = vadd.f32 %v656_v15, %v489_v20  ;;  %v2129_v20 = vld [vmem:[#allocation19_spill] sm:$0xff] }
 0x1bb   :  { %v2051_v60 = vpop.f32.mrf.mxu0  ;;  %v1573_v63 = vpop.f32.mrf.mxu1  ;;  %v501_v23 = vadd.f32 %v1983_v38, %v1993_v51  ;;  %v513_v38 = vadd.f32 %v1991_v47, %v2001_v59  ;;  %v525_v59 = vadd.f32 %v1999_v58, %v2009_v4  ;;  %v2127_v4 = vld [vmem:[#allocation14_spill] sm:$0xff] }
 0x1bc   :  { %2123 = vst [vmem:[#allocation25_spill] sm:$0xff] %v2051_v60  ;;  %v650_v60 = vadd.f32 %v1498_v62, %v483_v9  ;;  %v643_v17 = vadd.f32 %v642_v7, %v477_v55  ;;  %v678_v7 = vadd.f32 %v1504_v22, %v507_v24  ;;  %v840_v15 = vadd.f32 %v2023_v57, %v657_v31 }
 0x1bd   :  { %v2053_v3 = vpop.f32.mrf.mxu0  ;;  %v1163_v13 = vpop.f32.mrf.mxu1 }
 0x1be   :  { %2124 = vst [vmem:[#allocation26_spill] sm:$0xff] %v2053_v3  ;;  %v832_v2 = vadd.f32 %v1524_v34, %v650_v60  ;;  %v824_v36 = vadd.f32 %v823_v43, %v643_v17  ;;  %v519_v34 = vadd.f32 %v1987_v44, %v1997_v54  ;;  %v531_v44 = vadd.f32 %v1995_v52, %v2005_v1 }
 0x1bf   :  { %v2056_v29 = vpop.f32.mrf.mxu0  ;;  %v1576_v42 = vpop.f32.mrf.mxu1  ;;  %v685_v54 = vadd.f32 %v2039_v41, %v513_v38  ;;  %v543_v1 = vadd.f32 %v2003_v61, %v2013_v11  ;;  %v2130_v11 = vld [vmem:[#allocation17_spill] sm:$0xff] }
 0x1c0   :  { %2125 = vst [vmem:[#allocation27_spill] sm:$0xff] %v2056_v29  ;;  %v692_v51 = vadd.f32 %v1507_v35, %v519_v34 }
 0x1c1   :  { %v2059_v32 = vpop.f32.mrf.mxu0  ;;  %v1175_v27 = vpop.f32.mrf.mxu1 }
 0x1c2   :  { %2126 = vst [vmem:[#allocation28_spill] sm:$0xff] %v2059_v32  ;;  %v880_v60 = vadd.f32 %v2029_v14, %v692_v51  ;;  %v537_v14 = vadd.f32 %v2127_v4, %v2017_v19 }
 0x1c3   :  { %v1547_v3 = vpop.f32.mrf.mxu0  ;;  %v1579_v10 = vpop.f32.mrf.mxu1 }
 0x1c4   :  { %v1008_v46 = vadd.f32 %v1547_v3, %v816_v5  ;;  %v872_v5 = vadd.f32 %v2031_v16, %v685_v54 }
 0x1c5   :  { %v1001_v56 = vpop.f32.mrf.mxu0  ;;  %v1187_v39 = vpop.f32.mrf.mxu1  ;;  %v2132_v16 = vld [vmem:[#allocation26_spill] sm:$0xff] }
 0x1c6   :  { %v1170_v32 = vadd.f32 %v1573_v63, %v1008_v46  ;;  %v1002_v29 = vadd.f32 %v1001_v56, %v808_v0  ;;  %v555_v56 = vadd.f32 %v2131_v26, %v2130_v11 }
 0x1c7   :  { %v1550_v9 = vpop.f32.mrf.mxu0  ;;  %v1582_v25 = vpop.f32.mrf.mxu1 }
 0x1c8   :  { %v1164_v37 = vadd.f32 %v1163_v13, %v1002_v29  ;;  %v1020_v18 = vadd.f32 %v1550_v9, %v832_v2  ;;  %1290 = vst [vmem:[#allocation8 + $0x8] sm:$0xff] %v1170_v32  ;;  %v671_v13 = vadd.f32 %v670_v28, %v501_v23 }
 0x1c9   :  { %v1013_v62 = vpop.f32.mrf.mxu0  ;;  %v1199_v30 = vpop.f32.mrf.mxu1 }
 0x1ca   :  { %v1182_v12 = vadd.f32 %v1576_v42, %v1020_v18  ;;  %v1014_v50 = vadd.f32 %v1013_v62, %v824_v36  ;;  %1289 = vst [vmem:[#allocation8] sm:$0xff] %v1164_v37  ;;  %v864_v42 = vadd.f32 %v2025_v6, %v678_v7  ;;  %v856_v47 = vadd.f32 %v2027_v8, %v671_v13  ;;  %v2134_v37 = vld [vmem:[#allocation18_spill] sm:$0xff]  ;;  %v2135_v18 = vld [vmem:[#allocation16_spill] sm:$0xff]  ;;  %v2136_v62 = vld [vmem:[#allocation21_spill] sm:$0xff] }
 0x1cb   :  { %v1553_v33 = vpop.f32.mrf.mxu0  ;;  %v1585_v45 = vpop.f32.mrf.mxu1  ;;  %v706_v6 = vadd.f32 %v2043_v48, %v531_v44  ;;  %v699_v8 = vadd.f32 %v2047_v53, %v525_v59  ;;  %v549_v36 = vadd.f32 %v2135_v18, %v2134_v37  ;;  %v2139_v13 = vld [vmem:[#allocation28_spill] sm:$0xff] }
 0x1cc   :  { %v1176_v2 = vadd.f32 %v1175_v27, %v1014_v50  ;;  %v1032_v43 = vadd.f32 %v1553_v33, %v848_v40  ;;  %1292 = vst [vmem:[#allocation8 + $0x18] sm:$0xff] %v1182_v12  ;;  %v2137_v40 = vld [vmem:[#allocation27_spill] sm:$0xff] }
 0x1cd   :  { %v1025_v49 = vpop.f32.mrf.mxu0  ;;  %v1211_v22 = vpop.f32.mrf.mxu1  ;;  %v896_v61 = vadd.f32 %v2129_v20, %v706_v6  ;;  %v734_v7 = vadd.f32 %v2137_v40, %v555_v56 }
 0x1ce   :  { %v1194_v32 = vadd.f32 %v1579_v10, %v1032_v43  ;;  %v1026_v29 = vadd.f32 %v1025_v49, %v840_v15  ;;  %1291 = vst [vmem:[#allocation8 + $0x10] sm:$0xff] %v1176_v2  ;;  %v2128_v10 = vld [vmem:[#allocation25_spill] sm:$0xff]  ;;  %v727_v2 = vadd.f32 %v2139_v13, %v549_v36 }
 0x1cf   :  { %v1556_v57 = vpop.f32.mrf.mxu0  ;;  %v1588_v28 = vpop.f32.mrf.mxu1  ;;  %v720_v48 = vadd.f32 %v2128_v10, %v543_v1 }
 0x1d0   :  { %v1188_v27 = vadd.f32 %v1187_v39, %v1026_v29  ;;  %v1044_v55 = vadd.f32 %v1556_v57, %v864_v42  ;;  %1294 = vst [vmem:[#allocation8 + $0x28] sm:$0xff] %v1194_v32  ;;  %v713_v39 = vadd.f32 %v2132_v16, %v537_v14  ;;  %v2140_v32 = vld [vmem:[#allocation23_spill] sm:$0xff] }
 0x1d1   :  { %v1037_v35 = vpop.f32.mrf.mxu0  ;;  %v1223_v41 = vpop.f32.mrf.mxu1  ;;  %v928_v29 = vadd.f32 %v2140_v32, %v734_v7 }
 0x1d2   :  { %v1206_v63 = vadd.f32 %v1582_v25, %v1044_v55  ;;  %v1038_v52 = vadd.f32 %v1037_v35, %v856_v47  ;;  %1293 = vst [vmem:[#allocation8 + $0x20] sm:$0xff] %v1188_v27  ;;  %v2133_v25 = vld [vmem:[#allocation20_spill] sm:$0xff] }
 0x1d3   :  { %v1559_v3 = vpop.f32.mrf.mxu0  ;;  %v1591_v53 = vpop.f32.mrf.mxu1  ;;  %v888_v19 = vadd.f32 %v2133_v25, %v699_v8 }
 0x1d4   :  { %v1200_v21 = vadd.f32 %v1199_v30, %v1038_v52  ;;  %v1056_v58 = vadd.f32 %v1559_v3, %v880_v60  ;;  %1296 = vst [vmem:[#allocation8 + $0x38] sm:$0xff] %v1206_v63  ;;  %v912_v30 = vadd.f32 %v2136_v62, %v720_v48 }
 0x1d5   :  { %v1049_v17 = vpop.f32.mrf.mxu0  ;;  %v1235_v34 = vpop.f32.mrf.mxu1 }
 0x1d6   :  { %v1218_v46 = vadd.f32 %v1585_v45, %v1056_v58  ;;  %v1050_v0 = vadd.f32 %v1049_v17, %v872_v5  ;;  %1295 = vst [vmem:[#allocation8 + $0x30] sm:$0xff] %v1200_v21  ;;  %v2138_v45 = vld [vmem:[#allocation22_spill] sm:$0xff] }
 0x1d7   :  { %v1562_v24 = vpop.f32.mrf.mxu0  ;;  %v904_v15 = vadd.f32 %v2138_v45, %v713_v39  ;;  %v1594_v42 = vpop.f32.mrf.mxu1 }
 0x1d8   :  { %v1212_v31 = vadd.f32 %v1211_v22, %v1050_v0  ;;  %v1068_v9 = vadd.f32 %v1562_v24, %v896_v61  ;;  %1298 = vst [vmem:[#allocation8 + $0x48] sm:$0xff] %v1218_v46 }
 0x1d9   :  { %v1061_v23 = vpop.f32.mrf.mxu0  ;;  %v1247_v35 = vpop.f32.mrf.mxu1 }
 0x1da   :  { %v1230_v12 = vadd.f32 %v1588_v28, %v1068_v9  ;;  %v1062_v50 = vadd.f32 %v1061_v23, %v888_v19  ;;  %1297 = vst [vmem:[#allocation8 + $0x40] sm:$0xff] %v1212_v31  ;;  %v2141_v28 = vld [vmem:[#allocation24_spill] sm:$0xff] }
 0x1db   :  { %v1565_v33 = vpop.f32.mrf.mxu0  ;;  %v920_v27 = vadd.f32 %v2141_v28, %v727_v2 }
 0x1dc   :  { %v1224_v43 = vadd.f32 %v1223_v41, %v1062_v50  ;;  %v1080_v38 = vadd.f32 %v1565_v33, %v912_v30  ;;  %1300 = vst [vmem:[#allocation8 + $0x58] sm:$0xff] %v1230_v12 }
 0x1dd   :  { %v1073_v51 = vpop.f32.mrf.mxu0 }
 0x1de   :  { %v1242_v49 = vadd.f32 %v1591_v53, %v1080_v38  ;;  %v1074_v22 = vadd.f32 %v1073_v51, %v904_v15  ;;  %1299 = vst [vmem:[#allocation8 + $0x50] sm:$0xff] %v1224_v43 }
 0x1df   :  { %v1568_v44 = vpop.f32.mrf.mxu0 }
 0x1e0   :  { %v1236_v54 = vadd.f32 %v1235_v34, %v1074_v22  ;;  %v1092_v57 = vadd.f32 %v1568_v44, %v928_v29  ;;  %1302 = vst [vmem:[#allocation8 + $0x68] sm:$0xff] %v1242_v49 }
 0x1e1   :  { %v1085_v55 = vpop.f32.mrf.mxu0 }
 0x1e2   :  { %v1254_v47 = vadd.f32 %v1594_v42, %v1092_v57  ;;  %v1086_v59 = vadd.f32 %v1085_v55, %v920_v27  ;;  %1301 = vst [vmem:[#allocation8 + $0x60] sm:$0xff] %v1236_v54 }
 0x1e4   :  { %v1248_v60 = vadd.f32 %v1247_v35, %v1086_v59  ;;  %1304 = vst [vmem:[#allocation8 + $0x78] sm:$0xff] %v1254_v47 }
 0x1e6   :  { %1303 = vst [vmem:[#allocation8 + $0x70] sm:$0xff] %v1248_v60 }
 0x1e7   :  { %1677 = shalt.err (!%p1674_p5)
}
 0x1e8   :  { %s1698_s27 = smov 128   ;;  %s1699_s28 = smov 8  }
 0x1e9   :  { %1326 = dma.vmem_to_hbm [thread:$0]  %s1321_s25, 2048, %s2111_s3, [#allocation9], %s1698_s27, %s1698_s27, %s1699_s28  }
 0x1ea   :  { %1690 = dma.done.wait [#allocation4], 128  }
 0x1eb   :  { %1691 = vsyncadd [#allocation4], 4294967168 }
 0x1ec   :  { %1692 = dma.done.wait [#allocation9], 2048  }
 0x1ed   :  { %1693 = vsyncadd [#allocation9], 4294965248 }
 0x1ee   :  { %1333 = vsyncpa [#allocation3], 1 }
 0x1ef   :  { %1334 = vsyncpa [#allocation6], 1 }
 0x1f0   :  { %1335 = vsyncpa [#allocation4], 1 }
 0x1f1   :  { %1336 = vsyncpa [#allocation9], 1 }

</bundles_post_ra>
